<compile_context>
chip_gen: v7x
topology: tpu7x:2x2x1
jax: 0.10.0
libtpu: 0.0.40
codegen_flags: <defaults>
</compile_context>

<pallas_src>
import inspect

import jax
import jax.numpy as jnp
from jax import lax
from jax.experimental import pallas as pl
from jax.experimental.pallas import tpu as pltpu

LN_EPS = 1e-5
DEFAULT_TB = 2048   # max batch-tile rows (multiple of 8)
OUT_PAD = 16        # lane-padded merged head width: action(8) + value(1) + pad(7)

try:
    _HAS_PIPELINE_MODE = (hasattr(pl, "Buffered")
                          and "pipeline_mode" in inspect.signature(pl.BlockSpec).parameters)
except (TypeError, ValueError):  # pragma: no cover
    _HAS_PIPELINE_MODE = False


def _round_up(x, m):
    return (x + m - 1) // m * m


def _layernorm_noaffine(h):
    # Two-pass statistics (PyTorch biased variance); affine params are folded
    # into the next layer's weights/bias at setup, so none are applied here.
    mu = jnp.mean(h, axis=-1, keepdims=True)
    d = h - mu
    var = jnp.mean(d * d, axis=-1, keepdims=True)
    return d * lax.rsqrt(var + LN_EPS)


def mlp_kernel(obs_ref, state_ref,
               w1a_ref, w1b_ref, b1_ref,
               w2_ref, b2_ref,
               w3_ref, b3_ref,
               out_ref):
    # Layer 1: concat-free Linear (obs @ W1[:do] + state @ W1[do:]) -> ReLU -> LN.
    h = (jnp.dot(obs_ref[...], w1a_ref[...], preferred_element_type=jnp.float32)
         + jnp.dot(state_ref[...], w1b_ref[...], preferred_element_type=jnp.float32)
         + b1_ref[...])
    h = jnp.maximum(h, 0.0)
    h = _layernorm_noaffine(h)

    # Layer 2: Linear (LN1 affine folded into W2'/b2') -> ReLU -> LN.
    h = jnp.dot(h, w2_ref[...], preferred_element_type=jnp.float32) + b2_ref[...]
    h = jnp.maximum(h, 0.0)
    h = _layernorm_noaffine(h)

    # Merged output head: one MXU dot onto the lane-padded (32, 16) weight,
    # one lane-dense (TB, 16) store.  Wrapper slices action / value views.
    out_ref[...] = (jnp.dot(h, w3_ref[...], preferred_element_type=jnp.float32)
                    + b3_ref[...]).astype(out_ref.dtype)


def naive_mlp_forward(batch, params, *, tb=DEFAULT_TB):
    """batch: dict with 'obs' [B,4,8], 'state' [B,16]. Returns {'action','value'}."""
    obs = batch["obs"]
    state = batch["state"]
    B = obs.shape[0]
    obs_flat = obs.reshape(B, -1)        # [B, 32]
    state_flat = state.reshape(B, -1)    # [B, 16]
    d_obs = obs_flat.shape[1]

    # --- one-time parameter prep (all tiny; exact f32 algebra) --------------
    w1 = params["w1"]
    w1a, w1b = w1[:d_obs], w1[d_obs:]                       # concat-free layer 1
    b1 = params["b1"]
    # Fold LN1 affine into layer 2:  (z*g1 + be1) @ W2 + b2  ==  z @ W2' + b2'.
    w2f = params["g1"].reshape(-1, 1) * params["w2"]
    b2f = params["be1"] @ params["w2"] + params["b2"]
    # Fold LN2 affine into layer 3 and lane-pad the merged head to OUT_PAD.
    w3f = params["g2"].reshape(-1, 1) * params["w3"]
    b3f = params["be2"] @ params["w3"] + params["b3"]
    d_out = w3f.shape[1]                                     # 9 = action(8)+value(1)
    w3p = jnp.zeros((w3f.shape[0], OUT_PAD), w3f.dtype).at[:, :d_out].set(w3f)
    b3p = jnp.zeros((1, OUT_PAD), b3f.dtype).at[:, :d_out].set(b3f)

    # --- batch tiling --------------------------------------------------------
    if B <= 8:
        TB = B                              # single full-array block (tiny batches)
    else:
        # >= 2 grid steps (so the "parallel" axis can shard across v7x's two
        # TensorCores) while capping the tile at `tb` rows for the VMEM budget.
        TB = min(tb, _round_up(pl.cdiv(B, 2), 8))
    grid = (pl.cdiv(B, TB),)

    def batch_spec(ncols):
        return pl.BlockSpec((TB, ncols), lambda i: (i, 0))

    def const_spec(a, buffered):
        # Constant block index -> stays VMEM-resident across batch tiles.
        kwargs = {}
        if buffered and _HAS_PIPELINE_MODE:
            kwargs["pipeline_mode"] = pl.Buffered(1)        # single-buffer constants
        return pl.BlockSpec(a.shape, lambda i: (0,) * a.ndim, **kwargs)

    args = (obs_flat, state_flat, w1a, w1b, b1, w2f, b2f, w3p, b3p)

    def run(buffered_consts):
        in_specs = ([batch_spec(d_obs), batch_spec(state_flat.shape[1])]
                    + [const_spec(a, buffered_consts) for a in args[2:]])
        return pl.pallas_call(
            mlp_kernel,
            out_shape=jax.ShapeDtypeStruct((B, OUT_PAD), jnp.float32),
            grid=grid,
            in_specs=in_specs,
            out_specs=batch_spec(OUT_PAD),
            compiler_params=pltpu.CompilerParams(
                dimension_semantics=("parallel",)),           # 2-TC sharding on v7x
        )(*args)

    try:
        out = run(True)
    except Exception:  # pragma: no cover - Pallas build without Buffered(1) support
        out = run(False)

    # post = Identity; slice the lane-dense slab into the two outkeys.
    return {"action": out[:, 0:8], "value": out[:, 8:9]}


def init_params(key):
    """Deterministic parameter init (uniform, Kaiming-style bounds like nn.Linear)."""
    dims = [(48, 32), (32, 32), (32, 9)]
    keys = jax.random.split(key, 2 * len(dims))
    p = {}
    for i, (din, dout) in enumerate(dims):
        bound = 1.0 / jnp.sqrt(jnp.float32(din))
        w = jax.random.uniform(keys[2 * i], (din, dout), jnp.float32, -bound, bound)
        b = jax.random.uniform(keys[2 * i + 1], (1, dout), jnp.float32, -bound, bound)
        p[f"w{i + 1}"] = w
        p[f"b{i + 1}"] = b
    # LayerNorm affine params for the two hidden layers (PyTorch default init
    # would be ones/zeros; use non-trivial values so the fold is actually tested).
    k_g1, k_b1, k_g2, k_b2 = jax.random.split(keys[-1], 4)
    p["g1"] = 1.0 + 0.1 * jax.random.normal(k_g1, (1, 32), jnp.float32)
    p["be1"] = 0.1 * jax.random.normal(k_b1, (1, 32), jnp.float32)
    p["g2"] = 1.0 + 0.1 * jax.random.normal(k_g2, (1, 32), jnp.float32)
    p["be2"] = 0.1 * jax.random.normal(k_b2, (1, 32), jnp.float32)
    return p


def _ln_ref(h, gamma, beta):
    mu = jnp.mean(h, axis=-1, keepdims=True)
    var = jnp.mean((h - mu) * (h - mu), axis=-1, keepdims=True)
    return (h - mu) / jnp.sqrt(var + LN_EPS) * gamma + beta


def _reference_forward(batch, params):
    """Pure-JAX reference (explicit concat, un-folded LN affine) for checking."""
    x = jnp.concatenate([batch["obs"].reshape(batch["obs"].shape[0], -1),
                         batch["state"].reshape(batch["state"].shape[0], -1)], axis=-1)
    h = jnp.maximum(x @ params["w1"] + params["b1"], 0.0)
    h = _ln_ref(h, params["g1"], params["be1"])
    h = jnp.maximum(h @ params["w2"] + params["b2"], 0.0)
    h = _ln_ref(h, params["g2"], params["be2"])
    out = h @ params["w3"] + params["b3"]
    return {"action": out[:, 0:8], "value": out[:, 8:9]}


# TODO(synk): get_dim / get_postprocess / acti_dict / norm_dict are config-driven in
# the original repo; this script hard-codes obs(4,8)+state(16) -> action(8)+value(1),
# ReLU, LayerNorm, Identity post-processing.

if __name__ == "__main__":
    key = jax.random.PRNGKey(0)
    k_obs, k_state, k_param, k_obs2, k_state2 = jax.random.split(key, 5)
    params = init_params(k_param)

    # Small batch (single full-array block), exact-path correctness check.
    B = 2
    batch = {
        "obs": jax.random.normal(k_obs, (B, 4, 8), jnp.float32),
        "state": jax.random.normal(k_state, (B, 16), jnp.float32),
    }
    out = naive_mlp_forward(batch, params)
    out = jax.tree_util.tree_map(jax.block_until_ready, out)
    ref = _reference_forward(batch, params)
    for k in ("action", "value"):
        assert out[k].shape == ref[k].shape
        assert jnp.allclose(out[k], ref[k], atol=1e-4, rtol=1e-4), k

    # Larger batch: tiled / pipelined path with a partial last tile (tb=512 -> 3 steps).
    B2 = 1040
    batch2 = {
        "obs": jax.random.normal(k_obs2, (B2, 4, 8), jnp.float32),
        "state": jax.random.normal(k_state2, (B2, 16), jnp.float32),
    }
    ref2 = _reference_forward(batch2, params)

    out2 = naive_mlp_forward(batch2, params, tb=512)
    out2 = jax.tree_util.tree_map(jax.block_until_ready, out2)
    for k in ("action", "value"):
        assert out2[k].shape == ref2[k].shape
        assert jnp.allclose(out2[k], ref2[k], atol=1e-4, rtol=1e-4), k

    # Default tile cap: >=2 grid steps (520-row tiles), exact 2-step split here.
    out3 = naive_mlp_forward(batch2, params)
    out3 = jax.tree_util.tree_map(jax.block_until_ready, out3)
    for k in ("action", "value"):
        assert out3[k].shape == ref2[k].shape
        assert jnp.allclose(out3[k], ref2[k], atol=1e-4, rtol=1e-4), k

    print("KERNEL_OK")
</pallas_src>

<mosaic_0001>
module attributes {stable_mosaic.version = 11 : i64} {
  func.func @mlp_kernel(%arg0: i32, %arg1: memref<2x32xf32, #tpu.memory_space<vmem>>, %arg2: memref<2x16xf32, #tpu.memory_space<vmem>>, %arg3: memref<32x32xf32, #tpu.memory_space<vmem>>, %arg4: memref<16x32xf32, #tpu.memory_space<vmem>>, %arg5: memref<1x32xf32, #tpu.memory_space<vmem>>, %arg6: memref<32x32xf32, #tpu.memory_space<vmem>>, %arg7: memref<1x32xf32, #tpu.memory_space<vmem>>, %arg8: memref<32x16xf32, #tpu.memory_space<vmem>>, %arg9: memref<1x16xf32, #tpu.memory_space<vmem>>, %arg10: memref<2x16xf32, #tpu.memory_space<vmem>>) attributes {dimension_semantics = [#tpu.dimension_semantics<parallel>], iteration_bounds = array<i64: 1>, scalar_prefetch = 0 : i64, scratch_operands = 0 : i64, tpu.core_type = #tpu.core_type<tc>, window_params = [{transform_indices = @transform_0, window_bounds = array<i64: 2, 32>}, {transform_indices = @transform_1, window_bounds = array<i64: 2, 16>}, {pipeline_mode = #tpu.pipeline_mode<synchronous>, transform_indices = @transform_2, window_bounds = array<i64: 32, 32>}, {pipeline_mode = #tpu.pipeline_mode<synchronous>, transform_indices = @transform_3, window_bounds = array<i64: 16, 32>}, {pipeline_mode = #tpu.pipeline_mode<synchronous>, transform_indices = @transform_4, window_bounds = array<i64: 1, 32>}, {pipeline_mode = #tpu.pipeline_mode<synchronous>, transform_indices = @transform_5, window_bounds = array<i64: 32, 32>}, {pipeline_mode = #tpu.pipeline_mode<synchronous>, transform_indices = @transform_6, window_bounds = array<i64: 1, 32>}, {pipeline_mode = #tpu.pipeline_mode<synchronous>, transform_indices = @transform_7, window_bounds = array<i64: 32, 16>}, {pipeline_mode = #tpu.pipeline_mode<synchronous>, transform_indices = @transform_8, window_bounds = array<i64: 1, 16>}, {transform_indices = @transform_9, window_bounds = array<i64: 2, 16>}]} {
    %c0 = arith.constant 0 : index
    %c0_0 = arith.constant 0 : index
    %0 = vector.load %arg1[%c0, %c0_0] : memref<2x32xf32, #tpu.memory_space<vmem>>, vector<2x32xf32>
    %c0_1 = arith.constant 0 : index
    %c0_2 = arith.constant 0 : index
    %1 = vector.load %arg3[%c0_1, %c0_2] : memref<32x32xf32, #tpu.memory_space<vmem>>, vector<32x32xf32>
    %cst = arith.constant dense<0.000000e+00> : vector<2x32xf32>
    %2 = tpu.matmul %0, %1, %cst {dimension_numbers = #tpu.dot_dimension_numbers<[1], [0], [0], [1], [0, 0, 1, 1], [], []>} : vector<2x32xf32>, vector<32x32xf32>, vector<2x32xf32> -> vector<2x32xf32>
    %c0_3 = arith.constant 0 : index
    %c0_4 = arith.constant 0 : index
    %3 = vector.load %arg2[%c0_3, %c0_4] : memref<2x16xf32, #tpu.memory_space<vmem>>, vector<2x16xf32>
    %c0_5 = arith.constant 0 : index
    %c0_6 = arith.constant 0 : index
    %4 = vector.load %arg4[%c0_5, %c0_6] : memref<16x32xf32, #tpu.memory_space<vmem>>, vector<16x32xf32>
    %cst_7 = arith.constant dense<0.000000e+00> : vector<2x32xf32>
    %5 = tpu.matmul %3, %4, %cst_7 {dimension_numbers = #tpu.dot_dimension_numbers<[1], [0], [0], [1], [0, 0, 1, 1], [], []>} : vector<2x16xf32>, vector<16x32xf32>, vector<2x32xf32> -> vector<2x32xf32>
    %6 = arith.addf %2, %5 : vector<2x32xf32>
    %c0_8 = arith.constant 0 : index
    %c0_9 = arith.constant 0 : index
    %7 = vector.load %arg5[%c0_8, %c0_9] : memref<1x32xf32, #tpu.memory_space<vmem>>, vector<1x32xf32>
    %8 = vector.broadcast %7 : vector<1x32xf32> to vector<2x32xf32>
    %9 = arith.addf %6, %8 : vector<2x32xf32>
    %cst_10 = arith.constant 0.000000e+00 : f32
    %10 = vector.broadcast %cst_10 : f32 to vector<2x32xf32>
    %11 = arith.maximumf %9, %10 : vector<2x32xf32>
    %cst_11 = arith.constant dense<0.000000e+00> : vector<2xf32>
    %12 = vector.multi_reduction <add>, %11, %cst_11 [1] : vector<2x32xf32> to vector<2xf32>
    %13 = vector.shape_cast %12 : vector<2xf32> to vector<2x1xf32>
    %cst_12 = arith.constant 3.200000e+01 : f32
    %14 = vector.broadcast %cst_12 : f32 to vector<2x1xf32>
    %15 = arith.divf %13, %14 : vector<2x1xf32>
    %16 = vector.broadcast %15 : vector<2x1xf32> to vector<2x32xf32>
    %17 = arith.subf %11, %16 : vector<2x32xf32>
    %18 = arith.mulf %17, %17 : vector<2x32xf32>
    %cst_13 = arith.constant dense<0.000000e+00> : vector<2xf32>
    %19 = vector.multi_reduction <add>, %18, %cst_13 [1] : vector<2x32xf32> to vector<2xf32>
    %20 = vector.shape_cast %19 : vector<2xf32> to vector<2x1xf32>
    %cst_14 = arith.constant 3.200000e+01 : f32
    %21 = vector.broadcast %cst_14 : f32 to vector<2x1xf32>
    %22 = arith.divf %20, %21 : vector<2x1xf32>
    %cst_15 = arith.constant 9.99999974E-6 : f32
    %23 = vector.broadcast %cst_15 : f32 to vector<2x1xf32>
    %24 = arith.addf %22, %23 : vector<2x1xf32>
    %25 = math.rsqrt %24 : vector<2x1xf32>
    %26 = vector.broadcast %25 : vector<2x1xf32> to vector<2x32xf32>
    %27 = arith.mulf %17, %26 : vector<2x32xf32>
    %c0_16 = arith.constant 0 : index
    %c0_17 = arith.constant 0 : index
    %28 = vector.load %arg6[%c0_16, %c0_17] : memref<32x32xf32, #tpu.memory_space<vmem>>, vector<32x32xf32>
    %cst_18 = arith.constant dense<0.000000e+00> : vector<2x32xf32>
    %29 = tpu.matmul %27, %28, %cst_18 {dimension_numbers = #tpu.dot_dimension_numbers<[1], [0], [0], [1], [0, 0, 1, 1], [], []>} : vector<2x32xf32>, vector<32x32xf32>, vector<2x32xf32> -> vector<2x32xf32>
    %c0_19 = arith.constant 0 : index
    %c0_20 = arith.constant 0 : index
    %30 = vector.load %arg7[%c0_19, %c0_20] : memref<1x32xf32, #tpu.memory_space<vmem>>, vector<1x32xf32>
    %31 = vector.broadcast %30 : vector<1x32xf32> to vector<2x32xf32>
    %32 = arith.addf %29, %31 : vector<2x32xf32>
    %cst_21 = arith.constant 0.000000e+00 : f32
    %33 = vector.broadcast %cst_21 : f32 to vector<2x32xf32>
    %34 = arith.maximumf %32, %33 : vector<2x32xf32>
    %cst_22 = arith.constant dense<0.000000e+00> : vector<2xf32>
    %35 = vector.multi_reduction <add>, %34, %cst_22 [1] : vector<2x32xf32> to vector<2xf32>
    %36 = vector.shape_cast %35 : vector<2xf32> to vector<2x1xf32>
    %cst_23 = arith.constant 3.200000e+01 : f32
    %37 = vector.broadcast %cst_23 : f32 to vector<2x1xf32>
    %38 = arith.divf %36, %37 : vector<2x1xf32>
    %39 = vector.broadcast %38 : vector<2x1xf32> to vector<2x32xf32>
    %40 = arith.subf %34, %39 : vector<2x32xf32>
    %41 = arith.mulf %40, %40 : vector<2x32xf32>
    %cst_24 = arith.constant dense<0.000000e+00> : vector<2xf32>
    %42 = vector.multi_reduction <add>, %41, %cst_24 [1] : vector<2x32xf32> to vector<2xf32>
    %43 = vector.shape_cast %42 : vector<2xf32> to vector<2x1xf32>
    %cst_25 = arith.constant 3.200000e+01 : f32
    %44 = vector.broadcast %cst_25 : f32 to vector<2x1xf32>
    %45 = arith.divf %43, %44 : vector<2x1xf32>
    %cst_26 = arith.constant 9.99999974E-6 : f32
    %46 = vector.broadcast %cst_26 : f32 to vector<2x1xf32>
    %47 = arith.addf %45, %46 : vector<2x1xf32>
    %48 = math.rsqrt %47 : vector<2x1xf32>
    %49 = vector.broadcast %48 : vector<2x1xf32> to vector<2x32xf32>
    %50 = arith.mulf %40, %49 : vector<2x32xf32>
    %c0_27 = arith.constant 0 : index
    %c0_28 = arith.constant 0 : index
    %51 = vector.load %arg8[%c0_27, %c0_28] : memref<32x16xf32, #tpu.memory_space<vmem>>, vector<32x16xf32>
    %cst_29 = arith.constant dense<0.000000e+00> : vector<2x16xf32>
    %52 = tpu.matmul %50, %51, %cst_29 {dimension_numbers = #tpu.dot_dimension_numbers<[1], [0], [0], [1], [0, 0, 1, 1], [], []>} : vector<2x32xf32>, vector<32x16xf32>, vector<2x16xf32> -> vector<2x16xf32>
    %c0_30 = arith.constant 0 : index
    %c0_31 = arith.constant 0 : index
    %53 = vector.load %arg9[%c0_30, %c0_31] : memref<1x16xf32, #tpu.memory_space<vmem>>, vector<1x16xf32>
    %54 = vector.broadcast %53 : vector<1x16xf32> to vector<2x16xf32>
    %55 = arith.addf %52, %54 : vector<2x16xf32>
    %c0_32 = arith.constant 0 : index
    %c0_33 = arith.constant 0 : index
    %56 = vector.load %arg10[%c0_32, %c0_33] : memref<2x16xf32, #tpu.memory_space<vmem>>, vector<2x16xf32>
    tpu.vector_store %arg10[%c0_32, %c0_33], %55 {strides = array<i32>} : memref<2x16xf32, #tpu.memory_space<vmem>>, vector<2x16xf32>,
    return
  }
  func.func @transform_0(%arg0: i32) -> (i32, i32) {
    %c0_i32 = arith.constant 0 : i32
    %c0_i32_0 = arith.constant 0 : i32
    return %arg0, %c0_i32 : i32, i32
  }
  func.func @transform_1(%arg0: i32) -> (i32, i32) {
    %c0_i32 = arith.constant 0 : i32
    %c0_i32_0 = arith.constant 0 : i32
    return %arg0, %c0_i32 : i32, i32
  }
  func.func @transform_2(%arg0: i32) -> (i32, i32) {
    %c0_i32 = arith.constant 0 : i32
    %c0_i32_0 = arith.constant 0 : i32
    %c0_i32_1 = arith.constant 0 : i32
    return %c0_i32, %c0_i32_0 : i32, i32
  }
  func.func @transform_3(%arg0: i32) -> (i32, i32) {
    %c0_i32 = arith.constant 0 : i32
    %c0_i32_0 = arith.constant 0 : i32
    %c0_i32_1 = arith.constant 0 : i32
    return %c0_i32, %c0_i32_0 : i32, i32
  }
  func.func @transform_4(%arg0: i32) -> (i32, i32) {
    %c0_i32 = arith.constant 0 : i32
    %c0_i32_0 = arith.constant 0 : i32
    %c0_i32_1 = arith.constant 0 : i32
    return %c0_i32, %c0_i32_0 : i32, i32
  }
  func.func @transform_5(%arg0: i32) -> (i32, i32) {
    %c0_i32 = arith.constant 0 : i32
    %c0_i32_0 = arith.constant 0 : i32
    %c0_i32_1 = arith.constant 0 : i32
    return %c0_i32, %c0_i32_0 : i32, i32
  }
  func.func @transform_6(%arg0: i32) -> (i32, i32) {
    %c0_i32 = arith.constant 0 : i32
    %c0_i32_0 = arith.constant 0 : i32
    %c0_i32_1 = arith.constant 0 : i32
    return %c0_i32, %c0_i32_0 : i32, i32
  }
  func.func @transform_7(%arg0: i32) -> (i32, i32) {
    %c0_i32 = arith.constant 0 : i32
    %c0_i32_0 = arith.constant 0 : i32
    %c0_i32_1 = arith.constant 0 : i32
    return %c0_i32, %c0_i32_0 : i32, i32
  }
  func.func @transform_8(%arg0: i32) -> (i32, i32) {
    %c0_i32 = arith.constant 0 : i32
    %c0_i32_0 = arith.constant 0 : i32
    %c0_i32_1 = arith.constant 0 : i32
    return %c0_i32, %c0_i32_0 : i32, i32
  }
  func.func @transform_9(%arg0: i32) -> (i32, i32) {
    %c0_i32 = arith.constant 0 : i32
    %c0_i32_0 = arith.constant 0 : i32
    return %arg0, %c0_i32 : i32, i32
  }
}

module attributes {stable_mosaic.version = 11 : i64} {
  func.func @mlp_kernel(%arg0: i32, %arg1: memref<2x32xf32, #tpu.memory_space<vmem>>, %arg2: memref<2x16xf32, #tpu.memory_space<vmem>>, %arg3: memref<32x32xf32, #tpu.memory_space<vmem>>, %arg4: memref<16x32xf32, #tpu.memory_space<vmem>>, %arg5: memref<1x32xf32, #tpu.memory_space<vmem>>, %arg6: memref<32x32xf32, #tpu.memory_space<vmem>>, %arg7: memref<1x32xf32, #tpu.memory_space<vmem>>, %arg8: memref<32x16xf32, #tpu.memory_space<vmem>>, %arg9: memref<1x16xf32, #tpu.memory_space<vmem>>, %arg10: memref<2x16xf32, #tpu.memory_space<vmem>>) attributes {dimension_semantics = [#tpu.dimension_semantics<parallel>], iteration_bounds = array<i64: 1>, scalar_prefetch = 0 : i64, scratch_operands = 0 : i64, tpu.core_type = #tpu.core_type<tc>, window_params = [{transform_indices = @transform_0, window_bounds = array<i64: 2, 32>}, {transform_indices = @transform_1, window_bounds = array<i64: 2, 16>}, {pipeline_mode = #tpu.pipeline_mode<synchronous>, transform_indices = @transform_2, window_bounds = array<i64: 32, 32>}, {pipeline_mode = #tpu.pipeline_mode<synchronous>, transform_indices = @transform_3, window_bounds = array<i64: 16, 32>}, {pipeline_mode = #tpu.pipeline_mode<synchronous>, transform_indices = @transform_4, window_bounds = array<i64: 1, 32>}, {pipeline_mode = #tpu.pipeline_mode<synchronous>, transform_indices = @transform_5, window_bounds = array<i64: 32, 32>}, {pipeline_mode = #tpu.pipeline_mode<synchronous>, transform_indices = @transform_6, window_bounds = array<i64: 1, 32>}, {pipeline_mode = #tpu.pipeline_mode<synchronous>, transform_indices = @transform_7, window_bounds = array<i64: 32, 16>}, {pipeline_mode = #tpu.pipeline_mode<synchronous>, transform_indices = @transform_8, window_bounds = array<i64: 1, 16>}, {transform_indices = @transform_9, window_bounds = array<i64: 2, 16>}]} {
    %c0 = arith.constant 0 : index
    %c0_0 = arith.constant 0 : index
    %0 = vector.load %arg1[%c0, %c0_0] : memref<2x32xf32, #tpu.memory_space<vmem>>, vector<2x32xf32>
    %c0_1 = arith.constant 0 : index
    %c0_2 = arith.constant 0 : index
    %1 = vector.load %arg3[%c0_1, %c0_2] : memref<32x32xf32, #tpu.memory_space<vmem>>, vector<32x32xf32>
    %cst = arith.constant dense<0.000000e+00> : vector<2x32xf32>
    %2 = tpu.matmul %0, %1, %cst {dimension_numbers = #tpu.dot_dimension_numbers<[1], [0], [0], [1], [0, 0, 1, 1], [], []>} : vector<2x32xf32>, vector<32x32xf32>, vector<2x32xf32> -> vector<2x32xf32>
    %c0_3 = arith.constant 0 : index
    %c0_4 = arith.constant 0 : index
    %3 = vector.load %arg2[%c0_3, %c0_4] : memref<2x16xf32, #tpu.memory_space<vmem>>, vector<2x16xf32>
    %c0_5 = arith.constant 0 : index
    %c0_6 = arith.constant 0 : index
    %4 = vector.load %arg4[%c0_5, %c0_6] : memref<16x32xf32, #tpu.memory_space<vmem>>, vector<16x32xf32>
    %cst_7 = arith.constant dense<0.000000e+00> : vector<2x32xf32>
    %5 = tpu.matmul %3, %4, %cst_7 {dimension_numbers = #tpu.dot_dimension_numbers<[1], [0], [0], [1], [0, 0, 1, 1], [], []>} : vector<2x16xf32>, vector<16x32xf32>, vector<2x32xf32> -> vector<2x32xf32>
    %6 = arith.addf %2, %5 : vector<2x32xf32>
    %c0_8 = arith.constant 0 : index
    %c0_9 = arith.constant 0 : index
    %7 = vector.load %arg5[%c0_8, %c0_9] : memref<1x32xf32, #tpu.memory_space<vmem>>, vector<1x32xf32>
    %8 = vector.broadcast %7 : vector<1x32xf32> to vector<2x32xf32>
    %9 = arith.addf %6, %8 : vector<2x32xf32>
    %cst_10 = arith.constant 0.000000e+00 : f32
    %10 = vector.broadcast %cst_10 : f32 to vector<2x32xf32>
    %11 = arith.maximumf %9, %10 : vector<2x32xf32>
    %cst_11 = arith.constant dense<0.000000e+00> : vector<2xf32>
    %12 = vector.multi_reduction <add>, %11, %cst_11 [1] : vector<2x32xf32> to vector<2xf32>
    %13 = vector.shape_cast %12 : vector<2xf32> to vector<2x1xf32>
    %cst_12 = arith.constant 3.200000e+01 : f32
    %14 = vector.broadcast %cst_12 : f32 to vector<2x1xf32>
    %15 = arith.divf %13, %14 : vector<2x1xf32>
    %16 = vector.broadcast %15 : vector<2x1xf32> to vector<2x32xf32>
    %17 = arith.subf %11, %16 : vector<2x32xf32>
    %18 = arith.mulf %17, %17 : vector<2x32xf32>
    %cst_13 = arith.constant dense<0.000000e+00> : vector<2xf32>
    %19 = vector.multi_reduction <add>, %18, %cst_13 [1] : vector<2x32xf32> to vector<2xf32>
    %20 = vector.shape_cast %19 : vector<2xf32> to vector<2x1xf32>
    %cst_14 = arith.constant 3.200000e+01 : f32
    %21 = vector.broadcast %cst_14 : f32 to vector<2x1xf32>
    %22 = arith.divf %20, %21 : vector<2x1xf32>
    %cst_15 = arith.constant 9.99999974E-6 : f32
    %23 = vector.broadcast %cst_15 : f32 to vector<2x1xf32>
    %24 = arith.addf %22, %23 : vector<2x1xf32>
    %25 = math.rsqrt %24 : vector<2x1xf32>
    %26 = vector.broadcast %25 : vector<2x1xf32> to vector<2x32xf32>
    %27 = arith.mulf %17, %26 : vector<2x32xf32>
    %c0_16 = arith.constant 0 : index
    %c0_17 = arith.constant 0 : index
    %28 = vector.load %arg6[%c0_16, %c0_17] : memref<32x32xf32, #tpu.memory_space<vmem>>, vector<32x32xf32>
    %cst_18 = arith.constant dense<0.000000e+00> : vector<2x32xf32>
    %29 = tpu.matmul %27, %28, %cst_18 {dimension_numbers = #tpu.dot_dimension_numbers<[1], [0], [0], [1], [0, 0, 1, 1], [], []>} : vector<2x32xf32>, vector<32x32xf32>, vector<2x32xf32> -> vector<2x32xf32>
    %c0_19 = arith.constant 0 : index
    %c0_20 = arith.constant 0 : index
    %30 = vector.load %arg7[%c0_19, %c0_20] : memref<1x32xf32, #tpu.memory_space<vmem>>, vector<1x32xf32>
    %31 = vector.broadcast %30 : vector<1x32xf32> to vector<2x32xf32>
    %32 = arith.addf %29, %31 : vector<2x32xf32>
    %cst_21 = arith.constant 0.000000e+00 : f32
    %33 = vector.broadcast %cst_21 : f32 to vector<2x32xf32>
    %34 = arith.maximumf %32, %33 : vector<2x32xf32>
    %cst_22 = arith.constant dense<0.000000e+00> : vector<2xf32>
    %35 = vector.multi_reduction <add>, %34, %cst_22 [1] : vector<2x32xf32> to vector<2xf32>
    %36 = vector.shape_cast %35 : vector<2xf32> to vector<2x1xf32>
    %cst_23 = arith.constant 3.200000e+01 : f32
    %37 = vector.broadcast %cst_23 : f32 to vector<2x1xf32>
    %38 = arith.divf %36, %37 : vector<2x1xf32>
    %39 = vector.broadcast %38 : vector<2x1xf32> to vector<2x32xf32>
    %40 = arith.subf %34, %39 : vector<2x32xf32>
    %41 = arith.mulf %40, %40 : vector<2x32xf32>
    %cst_24 = arith.constant dense<0.000000e+00> : vector<2xf32>
    %42 = vector.multi_reduction <add>, %41, %cst_24 [1] : vector<2x32xf32> to vector<2xf32>
    %43 = vector.shape_cast %42 : vector<2xf32> to vector<2x1xf32>
    %cst_25 = arith.constant 3.200000e+01 : f32
    %44 = vector.broadcast %cst_25 : f32 to vector<2x1xf32>
    %45 = arith.divf %43, %44 : vector<2x1xf32>
    %cst_26 = arith.constant 9.99999974E-6 : f32
    %46 = vector.broadcast %cst_26 : f32 to vector<2x1xf32>
    %47 = arith.addf %45, %46 : vector<2x1xf32>
    %48 = math.rsqrt %47 : vector<2x1xf32>
    %49 = vector.broadcast %48 : vector<2x1xf32> to vector<2x32xf32>
    %50 = arith.mulf %40, %49 : vector<2x32xf32>
    %c0_27 = arith.constant 0 : index
    %c0_28 = arith.constant 0 : index
    %51 = vector.load %arg8[%c0_27, %c0_28] : memref<32x16xf32, #tpu.memory_space<vmem>>, vector<32x16xf32>
    %cst_29 = arith.constant dense<0.000000e+00> : vector<2x16xf32>
    %52 = tpu.matmul %50, %51, %cst_29 {dimension_numbers = #tpu.dot_dimension_numbers<[1], [0], [0], [1], [0, 0, 1, 1], [], []>} : vector<2x32xf32>, vector<32x16xf32>, vector<2x16xf32> -> vector<2x16xf32>
    %c0_30 = arith.constant 0 : index
    %c0_31 = arith.constant 0 : index
    %53 = vector.load %arg9[%c0_30, %c0_31] : memref<1x16xf32, #tpu.memory_space<vmem>>, vector<1x16xf32>
    %54 = vector.broadcast %53 : vector<1x16xf32> to vector<2x16xf32>
    %55 = arith.addf %52, %54 : vector<2x16xf32>
    %c0_32 = arith.constant 0 : index
    %c0_33 = arith.constant 0 : index
    %56 = vector.load %arg10[%c0_32, %c0_33] : memref<2x16xf32, #tpu.memory_space<vmem>>, vector<2x16xf32>
    tpu.vector_store %arg10[%c0_32, %c0_33], %55 {strides = array<i32>} : memref<2x16xf32, #tpu.memory_space<vmem>>, vector<2x16xf32>,
    return
  }
  func.func @transform_0(%arg0: i32) -> (i32, i32) {
    %c0_i32 = arith.constant 0 : i32
    %c0_i32_0 = arith.constant 0 : i32
    return %arg0, %c0_i32 : i32, i32
  }
  func.func @transform_1(%arg0: i32) -> (i32, i32) {
    %c0_i32 = arith.constant 0 : i32
    %c0_i32_0 = arith.constant 0 : i32
    return %arg0, %c0_i32 : i32, i32
  }
  func.func @transform_2(%arg0: i32) -> (i32, i32) {
    %c0_i32 = arith.constant 0 : i32
    %c0_i32_0 = arith.constant 0 : i32
    %c0_i32_1 = arith.constant 0 : i32
    return %c0_i32, %c0_i32_0 : i32, i32
  }
  func.func @transform_3(%arg0: i32) -> (i32, i32) {
    %c0_i32 = arith.constant 0 : i32
    %c0_i32_0 = arith.constant 0 : i32
    %c0_i32_1 = arith.constant 0 : i32
    return %c0_i32, %c0_i32_0 : i32, i32
  }
  func.func @transform_4(%arg0: i32) -> (i32, i32) {
    %c0_i32 = arith.constant 0 : i32
    %c0_i32_0 = arith.constant 0 : i32
    %c0_i32_1 = arith.constant 0 : i32
    return %c0_i32, %c0_i32_0 : i32, i32
  }
  func.func @transform_5(%arg0: i32) -> (i32, i32) {
    %c0_i32 = arith.constant 0 : i32
    %c0_i32_0 = arith.constant 0 : i32
    %c0_i32_1 = arith.constant 0 : i32
    return %c0_i32, %c0_i32_0 : i32, i32
  }
  func.func @transform_6(%arg0: i32) -> (i32, i32) {
    %c0_i32 = arith.constant 0 : i32
    %c0_i32_0 = arith.constant 0 : i32
    %c0_i32_1 = arith.constant 0 : i32
    return %c0_i32, %c0_i32_0 : i32, i32
  }
  func.func @transform_7(%arg0: i32) -> (i32, i32) {
    %c0_i32 = arith.constant 0 : i32
    %c0_i32_0 = arith.constant 0 : i32
    %c0_i32_1 = arith.constant 0 : i32
    return %c0_i32, %c0_i32_0 : i32, i32
  }
  func.func @transform_8(%arg0: i32) -> (i32, i32) {
    %c0_i32 = arith.constant 0 : i32
    %c0_i32_0 = arith.constant 0 : i32
    %c0_i32_1 = arith.constant 0 : i32
    return %c0_i32, %c0_i32_0 : i32, i32
  }
  func.func @transform_9(%arg0: i32) -> (i32, i32) {
    %c0_i32 = arith.constant 0 : i32
    %c0_i32_0 = arith.constant 0 : i32
    return %arg0, %c0_i32 : i32, i32
  }
}

</mosaic_0001>

<bundles_post_ra>
// kernel: tpu_custom_call.1
= control target key start
LH: loop header
LB: loop body
LE: loop exit
PB: predicated region body
PF: predicated region fallthrough
CT: control target
= control target key end

     0   :  { %14 = vsyncpa [#allocation3], 0  ;;  %s813_s0 = inlined_call_operand.vmem [shape: f32[2,32], index: 0, kind: input, shape index: {}]   ;;  %s814_s1 = inlined_call_operand.hbm [shape: f32[2,16], index: 1, kind: input, shape index: {}]   ;;  %s815_s2 = inlined_call_operand.vmem [shape: f32[32,32], index: 2, kind: input, shape index: {}]   ;;  %s816_s3 = inlined_call_operand.hbm [shape: f32[16,32], index: 3, kind: input, shape index: {}]   ;;  %s817_s4 = inlined_call_operand.hbm [shape: f32[1,32], index: 4, kind: input, shape index: {}]   ;;  %s818_s5 = inlined_call_operand.vmem [shape: f32[32,32], index: 5, kind: input, shape index: {}]   ;;  %s819_s6 = inlined_call_operand.vmem [shape: f32[1,32], index: 6, kind: input, shape index: {}]   ;;  %s820_s7 = inlined_call_operand.vmem [shape: f32[32,16], index: 7, kind: input, shape index: {}]   ;;  %s821_s8 = inlined_call_operand.vmem [shape: f32[1,16], index: 8, kind: input, shape index: {}]   ;;  %s822_s9 = inlined_call_operand.hbm [shape: f32[2,16], index: 9, kind: output, shape index: {}]  }
   0x1   :  { %15 = vsyncpa [#allocation6], 0 }
   0x2   :  { %16 = vsyncpa [#allocation4], 0  ;;  %s643_s30 = smov [#allocation5]   ;;  %s549_s13 = scalar_lea.hbm %s816_s3, 256 }
   0x3   :  { %s36_s10 = sshll.u32 %s643_s30, 4  ;;  %p550_p0 = scmp.ne.s32.totalorder %s816_s3, %s549_s13  ;;  %s37_s10 = int_to_ptr.vmem [resolvable:$true] %s36_s10 }
   0x4   :  { %p553_p1 = scmp.lt.u32.totalorder %s549_s13, %s816_s3 }
   0x6   :  { %p555_p2 = pnand %p553_p1, %p550_p0 }
   0x8   :  { %558 = shalt.err (!%p555_p2)
}
   0x9   :  { %s559_s18 = scalar_lea.vmem %s37_s10, 256  ;;  %p564_p4 = scmp.lt.s32.totalorder %s37_s10, %s37_s10 }
   0xa   :  { %p560_p3 = scmp.ne.s32.totalorder %s37_s10, %s559_s18  ;;  %p565_p5 = scmp.lt.s32.totalorder %s559_s18, %s559_s18 }
   0xc   :  { %p566_p6 = por %p565_p5, %p564_p4 }
   0xe   :  { %p567_p7 = pnand %p566_p6, %p560_p3 }
  0x10   :  { %570 = shalt.err (!%p567_p7)
}
  0x11   :  { %s644_s19 = smov 128   ;;  %s645_s20 = smov 8  }
  0x12   :  { %42 = dma.hbm_to_vmem [thread:$0]  %s816_s3, 256, %s37_s10, [#allocation6], %s644_s19, %s644_s19, %s645_s20  }
  0x13   :  { %s646_s23 = smov [#allocation2]   ;;  %s647_s25 = smov [#allocation7]  }
  0x14   :  { %s25_s24 = sshll.u32 %s646_s23, 4  ;;  %s49_s26 = sshll.u32 %s647_s25, 4  ;;  %s26_s24 = int_to_ptr.vmem [resolvable:$true] %s25_s24  ;;  %s50_s26 = int_to_ptr.vmem [resolvable:$true] %s49_s26 }
  0x15   :  { %s571_s29 = scalar_lea.hbm %s814_s1, 32 }
  0x16   :  { %p572_p8 = scmp.ne.s32.totalorder %s814_s1, %s571_s29  ;;  %p575_p9 = scmp.lt.u32.totalorder %s571_s29, %s814_s1 }
  0x18   :  { %p577_p10 = pnand %p575_p9, %p572_p8 }
  0x1a   :  { %580 = shalt.err (!%p577_p10)
}
  0x1b   :  { %s581_s3 = scalar_lea.vmem %s26_s24, 32  ;;  %p586_p12 = scmp.lt.s32.totalorder %s26_s24, %s26_s24 }
  0x1c   :  { %p582_p11 = scmp.ne.s32.totalorder %s26_s24, %s581_s3  ;;  %p587_p13 = scmp.lt.s32.totalorder %s581_s3, %s581_s3 }
  0x1e   :  { %p588_p0 = por %p587_p13, %p586_p12 }
  0x20   :  { %p589_p1 = pnand %p588_p0, %p582_p11 }
  0x22   :  { %592 = shalt.err (!%p589_p1)
}
  0x23   :  { %28 = dma.hbm_to_vmem [thread:$0]  %s814_s1, 32, %s26_s24, [#allocation3]  }
  0x24   :  { %s593_s17 = scalar_lea.hbm %s817_s4, 16 }
  0x25   :  { %p594_p2 = scmp.ne.s32.totalorder %s817_s4, %s593_s17  ;;  %p597_p3 = scmp.lt.u32.totalorder %s593_s17, %s817_s4 }
  0x27   :  { %p599_p4 = pnand %p597_p3, %p594_p2 }
  0x29   :  { %602 = shalt.err (!%p599_p4)
}
  0x2a   :  { %s603_s22 = scalar_lea.vmem %s50_s26, 16  ;;  %s607_s23 = scalar_lea.vmem %s50_s26, 32 }
  0x2b   :  { %p604_p5 = scmp.ne.s32.totalorder %s50_s26, %s603_s22  ;;  %p608_p6 = scmp.lt.s32.totalorder %s50_s26, %s50_s26 }
  0x2c   :  { %p609_p7 = scmp.lt.s32.totalorder %s607_s23, %s603_s22 }
  0x2e   :  { %p610_p8 = por %p609_p7, %p608_p6 }
  0x30   :  { %p611_p9 = pnand %p610_p8, %p604_p5 }
  0x32   :  { %614 = shalt.err (!%p611_p9)
}
  0x33   :  { %52 = dma.hbm_to_vmem [thread:$0]  %s817_s4, 16, %s50_s26, [#allocation6]  }
  0x34   :  { %637 = dma.done.wait [#allocation3], 32  }
  0x35   :  { %638 = vsyncadd [#allocation3], 4294967264 }
  0x36   :  { %639 = dma.done.wait [#allocation6], 272  }
  0x37   :  { %640 = vsyncadd [#allocation6], 4294967024  ;;  %v648_v0 = vmov 0.0|0.0   ;;  %vm649_vm0 = vmmov 0   ;;  %v650_v1 = vmov 0.0   ;;  %v71_v2 = vld [vmem:[%s815_s2] sm:$0xff] }
  0x38   :  { %518 = vmatprep.subr.bf16.mxu1 %v648_v0  ;;  %515 = vmatprep.subr.bf16.mxu0 %v648_v0  ;;  %v72_v3 = vld [vmem:[%s815_s2 + $0x8] sm:$0xff]  ;;  %v73_v7 = vld [vmem:[%s815_s2 + $0x10] sm:$0xff]  ;;  %v74_v8 = vld [vmem:[%s815_s2 + $0x18] sm:$0xff]  ;;  %vm78_vm1 = vcmask 130048   ;;  %vm152_vm2 = vcmask 261120   ;;  %vm235_vm3 = vcmask 254976  }
  0x39   :  { %479 = vmatprep.mubr.msk.f32.mxu0 %vm649_vm0, %v650_v1  ;;  %490 = vmatprep.mubr.msk.f32.mxu1 %vm649_vm0, %v650_v1  ;;  %v76_v4 = vld [vmem:[#allocation5] sm:$0xff]  ;;  %v519_v5 = vpack.c.bf16 %v72_v3, %v71_v2  ;;  %v77_v6 = vld [vmem:[#allocation5 + $0x8] sm:$0xff]  ;;  %v522_v10 = vpack.c.bf16 %v74_v8, %v73_v7  ;;  %v75_v11 = vld [vmem:[#allocation2] sm:$0x3]  ;;  %s651_s4 = smov [#allocation8]   ;;  %vm432_vm4 = vcmask 123904  }
  0x3a   :  { %v516_v9 = vpack.c.bf16 %v77_v6, %v76_v4  ;;  %v70_v12 = vld [vmem:[%s813_s0] sm:$0x3]  ;;  %v452_v16 = vld [vmem:[#allocation7] ss:$0 sm:$0xff]  ;;  %v251_v28 = vld [vmem:[%s818_s5 + $0x8] sm:$0xff]  ;;  %s440_s26 = sshll.u32 %s651_s4, 4  ;;  %s441_s26 = int_to_ptr.vmem [resolvable:$true] %s440_s26 }
  0x3b   :  { %520 = vmatpush3.bf16.msra.mxu1 %v519_v5  ;;  %v250_v27 = vld [vmem:[%s818_s5] sm:$0xff]  ;;  %v252_v30 = vld [vmem:[%s818_s5 + $0x10] sm:$0xff]  ;;  %v253_v31 = vld [vmem:[%s818_s5 + $0x18] sm:$0xff]  ;;  %p620_p11 = scmp.lt.s32.totalorder %s441_s26, %s441_s26 }
  0x3c   :  { %517 = vmatpush3.bf16.msra.mxu0 %v516_v9  ;;  %521 = vmatprep.subr.bf16.mxu1 %v648_v0  ;;  %v525_v29 = vpack.c.bf16 %v251_v28, %v250_v27  ;;  %v528_v32 = vpack.c.bf16 %v253_v31, %v252_v30  ;;  %v453_v38 = vld [vmem:[%s819_s6] ss:$0 sm:$0xff]  ;;  %v349_v50 = vld [vmem:[%s820_s7 + $0x8] sm:$0xff]  ;;  %v350_v52 = vld [vmem:[%s820_s7 + $0x10] sm:$0xff] }
  0x3d   :  { %524 = vmatprep.subr.bf16.mxu0 %v648_v0  ;;  %v348_v49 = vld [vmem:[%s820_s7] sm:$0xff]  ;;  %v351_v53 = vld [vmem:[%s820_s7 + $0x18] sm:$0xff]  ;;  %s615_s7 = scalar_lea.vmem %s441_s26, 32 }
  0x3e   :  { %v531_v51 = vpack.c.bf16 %v349_v50, %v348_v49  ;;  %v534_v54 = vpack.c.bf16 %v351_v53, %v350_v52  ;;  %v455_v60 = vld [vmem:[%s821_s8] ss:$0 sm:$0xff]  ;;  %p616_p10 = scmp.ne.s32.totalorder %s441_s26, %s615_s7  ;;  %p621_p12 = scmp.lt.s32.totalorder %s615_s7, %s615_s7 }
  0x3f   :  { %523 = vmatpush3.bf16.msra.mxu1 %v522_v10  ;;  %480 = vmatmul.mubr.msk.f32.vlgmr.msra.gmra.mrb[0].mxu0 %vm78_vm1, %v75_v11 }
  0x40   :  { %501 = vmatprep.mubr.msk.f32.mxu0 %vm649_vm0, %v650_v1  ;;  %530 = vmatprep.subr.bf16.mxu1 %v648_v0  ;;  %p622_p13 = por %p621_p12, %p620_p11 }
  0x41   :  { %526 = vmatpush3.bf16.msra.mxu0 %v525_v29 }
  0x42   :  { %491 = vmatmul.mubr.msk.f32.vlgmr.msra.gmra.mrb[0].mxu1 %vm152_vm2, %v70_v12  ;;  %527 = vmatprep.subr.bf16.mxu0 %v648_v0  ;;  %p623_p0 = pnand %p622_p13, %p616_p10 }
  0x43   :  { %512 = vmatprep.mubr.msk.f32.mxu1 %vm649_vm0, %v650_v1  ;;  %532 = vmatpush3.bf16.msra.mxu1 %v531_v51 }
  0x44   :  { %533 = vmatprep.subr.bf16.mxu1 %v648_v0 }
  0x45   :  { %529 = vmatpush3.bf16.msra.mxu0 %v528_v32 }
  0x47   :  { %535 = vmatpush3.bf16.msra.mxu1 %v534_v54 }
 0x112   :  { %v148_v13 = vpop.f32.mrb[0].mxu0 }
 0x113   :  { %v481_v14 = vpop.f32.mrb[1].mxu0 }
 0x115   :  { %v222_v15 = vpop.f32.mrb[0].mxu1 }
 0x116   :  { %v223_v17 = vadd.f32 %v222_v15, %v148_v13  ;;  %v492_v18 = vpop.f32.mrb[1].mxu1 }
 0x118   :  { %v233_v19 = vadd.f32 %v452_v16, %v223_v17 }
 0x11a   :  { %v234_v20 = vmax.f32 %v233_v19, 0.0 }
 0x11c   :  { %v236_v21 = vsel %vm235_vm3, %v234_v20, 0.0 }
 0x11d   :  { %237 = vadd.xlane.f32.xlu0 %v236_v21 }
 0x1aa   :  { %v238_v22 = vpop.xlane.xlu0 %237 }
 0x1ab   :  { %v240_v23 = vmul.f32 0.03125, %v238_v22 }
 0x1ad   :  { %v241_v24 = vsub.f32 %v234_v20, %v240_v23 }
 0x1af   :  { %v242_v25 = vmul.f32 %v241_v24, %v241_v24 }
 0x1b1   :  { %v243_v26 = vsel %vm235_vm3, %v242_v25, 0.0 }
 0x1b2   :  { %244 = vadd.xlane.f32.xlu0 %v243_v26 }
 0x23f   :  { %v245_v33 = vpop.xlane.xlu0 %244 }
 0x240   :  { %v246_v34 = vmul.f32 0.03125, %v245_v33 }
 0x242   :  { %v247_v35 = vadd.f32 1e-05, %v246_v34 }
 0x244   :  { %545 = vrsqrt.f32 %v247_v35 }
 0x24e   :  { %v546_v36 = vpop.eup %545 }
 0x24f   :  { %v249_v37 = vmul.f32 %v546_v36, %v241_v24 }
 0x251   :  { %502 = vmatmul.mubr.msk.f32.vlgmr.msra.gmra.mrb[2].mxu0 %vm152_vm2, %v249_v37 }
 0x324   :  { %v330_v39 = vpop.f32.mrb[2].mxu0 }
 0x325   :  { %v331_v40 = vadd.f32 %v453_v38, %v330_v39  ;;  %v503_v41 = vpop.f32.mrb[3].mxu0 }
 0x327   :  { %v334_v42 = vmax.f32 %v331_v40, 0.0 }
 0x329   :  { %v335_v43 = vsel %vm235_vm3, %v334_v42, 0.0 }
 0x32a   :  { %336 = vadd.xlane.f32.xlu1 %v335_v43 }
 0x3b7   :  { %v337_v44 = vpop.xlane.xlu1 %336 }
 0x3b8   :  { %v338_v45 = vmul.f32 0.03125, %v337_v44 }
 0x3ba   :  { %v339_v46 = vsub.f32 %v334_v42, %v338_v45 }
 0x3bc   :  { %v340_v47 = vmul.f32 %v339_v46, %v339_v46 }
 0x3be   :  { %v341_v48 = vsel %vm235_vm3, %v340_v47, 0.0 }
 0x3bf   :  { %342 = vadd.xlane.f32.xlu1 %v341_v48 }
 0x44c   :  { %v343_v55 = vpop.xlane.xlu1 %342 }
 0x44d   :  { %v344_v56 = vmul.f32 0.03125, %v343_v55 }
 0x44f   :  { %v345_v57 = vadd.f32 1e-05, %v344_v56 }
 0x451   :  { %547 = vrsqrt.f32 %v345_v57 }
 0x45b   :  { %v548_v58 = vpop.eup %547 }
 0x45c   :  { %v347_v59 = vmul.f32 %v548_v58, %v339_v46 }
 0x45e   :  { %513 = vmatmul.mubr.msk.f32.vlgmr.msra.gmra.mrb[2].mxu1 %vm152_vm2, %v347_v59 }
 0x531   :  { %v428_v61 = vpop.f32.mrb[2].mxu1 }
 0x532   :  { %v429_v62 = vadd.f32 %v455_v60, %v428_v61  ;;  %v514_v63 = vpop.f32.mrb[3].mxu1 }
 0x534   :  { %433 = vst.msk [vmem:[#allocation8] sm:$0x3] %vm432_vm4, %v429_v62 }
 0x535   :  { %626 = shalt.err (!%p623_p0)
}
 0x536   :  { %s627_s30 = scalar_lea.hbm %s822_s9, 32 }
 0x537   :  { %p628_p1 = scmp.ne.s32.totalorder %s822_s9, %s627_s30  ;;  %p631_p2 = scmp.lt.u32.totalorder %s627_s30, %s822_s9 }
 0x539   :  { %p633_p3 = pnand %p631_p2, %p628_p1 }
 0x53b   :  { %636 = shalt.err (!%p633_p3)
}
 0x53c   :  { %443 = dma.vmem_to_hbm [thread:$0]  %s441_s26, 32, %s822_s9, [#allocation4]  }
 0x53d   :  { %641 = dma.done.wait [#allocation4], 32  }
 0x53e   :  { %642 = vsyncadd [#allocation4], 4294967264 }
 0x53f   :  { %447 = vsyncpa [#allocation3], 1 }
 0x540   :  { %448 = vsyncpa [#allocation6], 1 }
 0x541   :  { %449 = vsyncpa [#allocation4], 1 }

// kernel: tpu_custom_call.1
= control target key start
LH: loop header
LB: loop body
LE: loop exit
PB: predicated region body
PF: predicated region fallthrough
CT: control target
= control target key end

     0   :  { %14 = vsyncpa [#allocation3], 0  ;;  %s813_s0 = inlined_call_operand.vmem [shape: f32[2,32], index: 0, kind: input, shape index: {}]   ;;  %s814_s1 = inlined_call_operand.hbm [shape: f32[2,16], index: 1, kind: input, shape index: {}]   ;;  %s815_s2 = inlined_call_operand.vmem [shape: f32[32,32], index: 2, kind: input, shape index: {}]   ;;  %s816_s3 = inlined_call_operand.hbm [shape: f32[16,32], index: 3, kind: input, shape index: {}]   ;;  %s817_s4 = inlined_call_operand.hbm [shape: f32[1,32], index: 4, kind: input, shape index: {}]   ;;  %s818_s5 = inlined_call_operand.vmem [shape: f32[32,32], index: 5, kind: input, shape index: {}]   ;;  %s819_s6 = inlined_call_operand.vmem [shape: f32[1,32], index: 6, kind: input, shape index: {}]   ;;  %s820_s7 = inlined_call_operand.vmem [shape: f32[32,16], index: 7, kind: input, shape index: {}]   ;;  %s821_s8 = inlined_call_operand.vmem [shape: f32[1,16], index: 8, kind: input, shape index: {}]   ;;  %s822_s9 = inlined_call_operand.hbm [shape: f32[2,16], index: 9, kind: output, shape index: {}]  }
   0x1   :  { %15 = vsyncpa [#allocation6], 0 }
   0x2   :  { %16 = vsyncpa [#allocation4], 0  ;;  %s643_s30 = smov [#allocation5]   ;;  %s549_s13 = scalar_lea.hbm %s816_s3, 256 }
   0x3   :  { %s36_s10 = sshll.u32 %s643_s30, 4  ;;  %p550_p0 = scmp.ne.s32.totalorder %s816_s3, %s549_s13  ;;  %s37_s10 = int_to_ptr.vmem [resolvable:$true] %s36_s10 }
   0x4   :  { %p553_p1 = scmp.lt.u32.totalorder %s549_s13, %s816_s3 }
   0x6   :  { %p555_p2 = pnand %p553_p1, %p550_p0 }
   0x8   :  { %558 = shalt.err (!%p555_p2)
}
   0x9   :  { %s559_s18 = scalar_lea.vmem %s37_s10, 256  ;;  %p564_p4 = scmp.lt.s32.totalorder %s37_s10, %s37_s10 }
   0xa   :  { %p560_p3 = scmp.ne.s32.totalorder %s37_s10, %s559_s18  ;;  %p565_p5 = scmp.lt.s32.totalorder %s559_s18, %s559_s18 }
   0xc   :  { %p566_p6 = por %p565_p5, %p564_p4 }
   0xe   :  { %p567_p7 = pnand %p566_p6, %p560_p3 }
  0x10   :  { %570 = shalt.err (!%p567_p7)
}
  0x11   :  { %s644_s19 = smov 128   ;;  %s645_s20 = smov 8  }
  0x12   :  { %42 = dma.hbm_to_vmem [thread:$0]  %s816_s3, 256, %s37_s10, [#allocation6], %s644_s19, %s644_s19, %s645_s20  }
  0x13   :  { %s646_s23 = smov [#allocation2]   ;;  %s647_s25 = smov [#allocation7]  }
  0x14   :  { %s25_s24 = sshll.u32 %s646_s23, 4  ;;  %s49_s26 = sshll.u32 %s647_s25, 4  ;;  %s26_s24 = int_to_ptr.vmem [resolvable:$true] %s25_s24  ;;  %s50_s26 = int_to_ptr.vmem [resolvable:$true] %s49_s26 }
  0x15   :  { %s571_s29 = scalar_lea.hbm %s814_s1, 32 }
  0x16   :  { %p572_p8 = scmp.ne.s32.totalorder %s814_s1, %s571_s29  ;;  %p575_p9 = scmp.lt.u32.totalorder %s571_s29, %s814_s1 }
  0x18   :  { %p577_p10 = pnand %p575_p9, %p572_p8 }
  0x1a   :  { %580 = shalt.err (!%p577_p10)
}
  0x1b   :  { %s581_s3 = scalar_lea.vmem %s26_s24, 32  ;;  %p586_p12 = scmp.lt.s32.totalorder %s26_s24, %s26_s24 }
  0x1c   :  { %p582_p11 = scmp.ne.s32.totalorder %s26_s24, %s581_s3  ;;  %p587_p13 = scmp.lt.s32.totalorder %s581_s3, %s581_s3 }
  0x1e   :  { %p588_p0 = por %p587_p13, %p586_p12 }
  0x20   :  { %p589_p1 = pnand %p588_p0, %p582_p11 }
  0x22   :  { %592 = shalt.err (!%p589_p1)
}
  0x23   :  { %28 = dma.hbm_to_vmem [thread:$0]  %s814_s1, 32, %s26_s24, [#allocation3]  }
  0x24   :  { %s593_s17 = scalar_lea.hbm %s817_s4, 16 }
  0x25   :  { %p594_p2 = scmp.ne.s32.totalorder %s817_s4, %s593_s17  ;;  %p597_p3 = scmp.lt.u32.totalorder %s593_s17, %s817_s4 }
  0x27   :  { %p599_p4 = pnand %p597_p3, %p594_p2 }
  0x29   :  { %602 = shalt.err (!%p599_p4)
}
  0x2a   :  { %s603_s22 = scalar_lea.vmem %s50_s26, 16  ;;  %s607_s23 = scalar_lea.vmem %s50_s26, 32 }
  0x2b   :  { %p604_p5 = scmp.ne.s32.totalorder %s50_s26, %s603_s22  ;;  %p608_p6 = scmp.lt.s32.totalorder %s50_s26, %s50_s26 }
  0x2c   :  { %p609_p7 = scmp.lt.s32.totalorder %s607_s23, %s603_s22 }
  0x2e   :  { %p610_p8 = por %p609_p7, %p608_p6 }
  0x30   :  { %p611_p9 = pnand %p610_p8, %p604_p5 }
  0x32   :  { %614 = shalt.err (!%p611_p9)
}
  0x33   :  { %52 = dma.hbm_to_vmem [thread:$0]  %s817_s4, 16, %s50_s26, [#allocation6]  }
  0x34   :  { %637 = dma.done.wait [#allocation3], 32  }
  0x35   :  { %638 = vsyncadd [#allocation3], 4294967264 }
  0x36   :  { %639 = dma.done.wait [#allocation6], 272  }
  0x37   :  { %640 = vsyncadd [#allocation6], 4294967024  ;;  %v648_v0 = vmov 0.0|0.0   ;;  %vm649_vm0 = vmmov 0   ;;  %v650_v1 = vmov 0.0   ;;  %v71_v2 = vld [vmem:[%s815_s2] sm:$0xff] }
  0x38   :  { %518 = vmatprep.subr.bf16.mxu1 %v648_v0  ;;  %515 = vmatprep.subr.bf16.mxu0 %v648_v0  ;;  %v72_v3 = vld [vmem:[%s815_s2 + $0x8] sm:$0xff]  ;;  %v73_v7 = vld [vmem:[%s815_s2 + $0x10] sm:$0xff]  ;;  %v74_v8 = vld [vmem:[%s815_s2 + $0x18] sm:$0xff]  ;;  %vm78_vm1 = vcmask 130048   ;;  %vm152_vm2 = vcmask 261120   ;;  %vm235_vm3 = vcmask 254976  }
  0x39   :  { %479 = vmatprep.mubr.msk.f32.mxu0 %vm649_vm0, %v650_v1  ;;  %490 = vmatprep.mubr.msk.f32.mxu1 %vm649_vm0, %v650_v1  ;;  %v76_v4 = vld [vmem:[#allocation5] sm:$0xff]  ;;  %v519_v5 = vpack.c.bf16 %v72_v3, %v71_v2  ;;  %v77_v6 = vld [vmem:[#allocation5 + $0x8] sm:$0xff]  ;;  %v522_v10 = vpack.c.bf16 %v74_v8, %v73_v7  ;;  %v75_v11 = vld [vmem:[#allocation2] sm:$0x3]  ;;  %s651_s4 = smov [#allocation8]   ;;  %vm432_vm4 = vcmask 123904  }
  0x3a   :  { %v516_v9 = vpack.c.bf16 %v77_v6, %v76_v4  ;;  %v70_v12 = vld [vmem:[%s813_s0] sm:$0x3]  ;;  %v452_v16 = vld [vmem:[#allocation7] ss:$0 sm:$0xff]  ;;  %v251_v28 = vld [vmem:[%s818_s5 + $0x8] sm:$0xff]  ;;  %s440_s26 = sshll.u32 %s651_s4, 4  ;;  %s441_s26 = int_to_ptr.vmem [resolvable:$true] %s440_s26 }
  0x3b   :  { %520 = vmatpush3.bf16.msra.mxu1 %v519_v5  ;;  %v250_v27 = vld [vmem:[%s818_s5] sm:$0xff]  ;;  %v252_v30 = vld [vmem:[%s818_s5 + $0x10] sm:$0xff]  ;;  %v253_v31 = vld [vmem:[%s818_s5 + $0x18] sm:$0xff]  ;;  %p620_p11 = scmp.lt.s32.totalorder %s441_s26, %s441_s26 }
  0x3c   :  { %517 = vmatpush3.bf16.msra.mxu0 %v516_v9  ;;  %521 = vmatprep.subr.bf16.mxu1 %v648_v0  ;;  %v525_v29 = vpack.c.bf16 %v251_v28, %v250_v27  ;;  %v528_v32 = vpack.c.bf16 %v253_v31, %v252_v30  ;;  %v453_v38 = vld [vmem:[%s819_s6] ss:$0 sm:$0xff]  ;;  %v349_v50 = vld [vmem:[%s820_s7 + $0x8] sm:$0xff]  ;;  %v350_v52 = vld [vmem:[%s820_s7 + $0x10] sm:$0xff] }
  0x3d   :  { %524 = vmatprep.subr.bf16.mxu0 %v648_v0  ;;  %v348_v49 = vld [vmem:[%s820_s7] sm:$0xff]  ;;  %v351_v53 = vld [vmem:[%s820_s7 + $0x18] sm:$0xff]  ;;  %s615_s7 = scalar_lea.vmem %s441_s26, 32 }
  0x3e   :  { %v531_v51 = vpack.c.bf16 %v349_v50, %v348_v49  ;;  %v534_v54 = vpack.c.bf16 %v351_v53, %v350_v52  ;;  %v455_v60 = vld [vmem:[%s821_s8] ss:$0 sm:$0xff]  ;;  %p616_p10 = scmp.ne.s32.totalorder %s441_s26, %s615_s7  ;;  %p621_p12 = scmp.lt.s32.totalorder %s615_s7, %s615_s7 }
  0x3f   :  { %523 = vmatpush3.bf16.msra.mxu1 %v522_v10  ;;  %480 = vmatmul.mubr.msk.f32.vlgmr.msra.gmra.mrb[0].mxu0 %vm78_vm1, %v75_v11 }
  0x40   :  { %501 = vmatprep.mubr.msk.f32.mxu0 %vm649_vm0, %v650_v1  ;;  %530 = vmatprep.subr.bf16.mxu1 %v648_v0  ;;  %p622_p13 = por %p621_p12, %p620_p11 }
  0x41   :  { %526 = vmatpush3.bf16.msra.mxu0 %v525_v29 }
  0x42   :  { %491 = vmatmul.mubr.msk.f32.vlgmr.msra.gmra.mrb[0].mxu1 %vm152_vm2, %v70_v12  ;;  %527 = vmatprep.subr.bf16.mxu0 %v648_v0  ;;  %p623_p0 = pnand %p622_p13, %p616_p10 }
  0x43   :  { %512 = vmatprep.mubr.msk.f32.mxu1 %vm649_vm0, %v650_v1  ;;  %532 = vmatpush3.bf16.msra.mxu1 %v531_v51 }
  0x44   :  { %533 = vmatprep.subr.bf16.mxu1 %v648_v0 }
  0x45   :  { %529 = vmatpush3.bf16.msra.mxu0 %v528_v32 }
  0x47   :  { %535 = vmatpush3.bf16.msra.mxu1 %v534_v54 }
 0x112   :  { %v148_v13 = vpop.f32.mrb[0].mxu0 }
 0x113   :  { %v481_v14 = vpop.f32.mrb[1].mxu0 }
 0x115   :  { %v222_v15 = vpop.f32.mrb[0].mxu1 }
 0x116   :  { %v223_v17 = vadd.f32 %v222_v15, %v148_v13  ;;  %v492_v18 = vpop.f32.mrb[1].mxu1 }
 0x118   :  { %v233_v19 = vadd.f32 %v452_v16, %v223_v17 }
 0x11a   :  { %v234_v20 = vmax.f32 %v233_v19, 0.0 }
 0x11c   :  { %v236_v21 = vsel %vm235_vm3, %v234_v20, 0.0 }
 0x11d   :  { %237 = vadd.xlane.f32.xlu0 %v236_v21 }
 0x1aa   :  { %v238_v22 = vpop.xlane.xlu0 %237 }
 0x1ab   :  { %v240_v23 = vmul.f32 0.03125, %v238_v22 }
 0x1ad   :  { %v241_v24 = vsub.f32 %v234_v20, %v240_v23 }
 0x1af   :  { %v242_v25 = vmul.f32 %v241_v24, %v241_v24 }
 0x1b1   :  { %v243_v26 = vsel %vm235_vm3, %v242_v25, 0.0 }
 0x1b2   :  { %244 = vadd.xlane.f32.xlu0 %v243_v26 }
 0x23f   :  { %v245_v33 = vpop.xlane.xlu0 %244 }
 0x240   :  { %v246_v34 = vmul.f32 0.03125, %v245_v33 }
 0x242   :  { %v247_v35 = vadd.f32 1e-05, %v246_v34 }
 0x244   :  { %545 = vrsqrt.f32 %v247_v35 }
 0x24e   :  { %v546_v36 = vpop.eup %545 }
 0x24f   :  { %v249_v37 = vmul.f32 %v546_v36, %v241_v24 }
 0x251   :  { %502 = vmatmul.mubr.msk.f32.vlgmr.msra.gmra.mrb[2].mxu0 %vm152_vm2, %v249_v37 }
 0x324   :  { %v330_v39 = vpop.f32.mrb[2].mxu0 }
 0x325   :  { %v331_v40 = vadd.f32 %v453_v38, %v330_v39  ;;  %v503_v41 = vpop.f32.mrb[3].mxu0 }
 0x327   :  { %v334_v42 = vmax.f32 %v331_v40, 0.0 }
 0x329   :  { %v335_v43 = vsel %vm235_vm3, %v334_v42, 0.0 }
 0x32a   :  { %336 = vadd.xlane.f32.xlu1 %v335_v43 }
 0x3b7   :  { %v337_v44 = vpop.xlane.xlu1 %336 }
 0x3b8   :  { %v338_v45 = vmul.f32 0.03125, %v337_v44 }
 0x3ba   :  { %v339_v46 = vsub.f32 %v334_v42, %v338_v45 }
 0x3bc   :  { %v340_v47 = vmul.f32 %v339_v46, %v339_v46 }
 0x3be   :  { %v341_v48 = vsel %vm235_vm3, %v340_v47, 0.0 }
 0x3bf   :  { %342 = vadd.xlane.f32.xlu1 %v341_v48 }
 0x44c   :  { %v343_v55 = vpop.xlane.xlu1 %342 }
 0x44d   :  { %v344_v56 = vmul.f32 0.03125, %v343_v55 }
 0x44f   :  { %v345_v57 = vadd.f32 1e-05, %v344_v56 }
 0x451   :  { %547 = vrsqrt.f32 %v345_v57 }
 0x45b   :  { %v548_v58 = vpop.eup %547 }
 0x45c   :  { %v347_v59 = vmul.f32 %v548_v58, %v339_v46 }
 0x45e   :  { %513 = vmatmul.mubr.msk.f32.vlgmr.msra.gmra.mrb[2].mxu1 %vm152_vm2, %v347_v59 }
 0x531   :  { %v428_v61 = vpop.f32.mrb[2].mxu1 }
 0x532   :  { %v429_v62 = vadd.f32 %v455_v60, %v428_v61  ;;  %v514_v63 = vpop.f32.mrb[3].mxu1 }
 0x534   :  { %433 = vst.msk [vmem:[#allocation8] sm:$0x3] %vm432_vm4, %v429_v62 }
 0x535   :  { %626 = shalt.err (!%p623_p0)
}
 0x536   :  { %s627_s30 = scalar_lea.hbm %s822_s9, 32 }
 0x537   :  { %p628_p1 = scmp.ne.s32.totalorder %s822_s9, %s627_s30  ;;  %p631_p2 = scmp.lt.u32.totalorder %s627_s30, %s822_s9 }
 0x539   :  { %p633_p3 = pnand %p631_p2, %p628_p1 }
 0x53b   :  { %636 = shalt.err (!%p633_p3)
}
 0x53c   :  { %443 = dma.vmem_to_hbm [thread:$0]  %s441_s26, 32, %s822_s9, [#allocation4]  }
 0x53d   :  { %641 = dma.done.wait [#allocation4], 32  }
 0x53e   :  { %642 = vsyncadd [#allocation4], 4294967264 }
 0x53f   :  { %447 = vsyncpa [#allocation3], 1 }
 0x540   :  { %448 = vsyncpa [#allocation6], 1 }
 0x541   :  { %449 = vsyncpa [#allocation4], 1 }

</bundles_post_ra>
